<compile_context>
chip_gen: v5e
topology: v5e:2x2
jax: 0.10.0
libtpu: 0.0.40
codegen_flags: <defaults>
</compile_context>

<pallas_src>
import jax
import jax.numpy as jnp
from jax.experimental import pallas as pl
from jax.experimental.pallas import tpu as pltpu

# ---- problem sizes implied by the PyTorch module -------------------------
NUM_NUMERIC = 14                      # adults_data.shape[1] - 1 (label dropped)
NUM_CAT     = 15                      # one-hot 'occupation' dummies
D_IN        = NUM_NUMERIC + NUM_CAT   # 29
D_PACK      = 32                      # packed input features (8-mult, 64B rows)
H1          = 40
H2          = 20
D_OUT       = 1

H_PAD       = 128                     # hidden dims padded to one lane width
W3_ROWS     = 8                       # layer-3 LHS padded to a full sublane group
LANES       = 128
LEAKY_SLOPE = 0.01                    # nn.LeakyReLU default
TILE_B      = 8192                    # batch rows (lanes) per grid step


def _round_up(n, m):
    return ((n + m - 1) // m) * m


def _pad_to(arr, shape):
    pads = [(0, t - s) for s, t in zip(arr.shape, shape)]
    return jnp.pad(arr, pads)


def _choose_tile(b_pad, tile_b):
    """Pick the batch (lane) tile: big tiles amortise the ~0.35us/step overhead,
    but keep >= 2-4 grid steps on large batches so v7x's two TensorCores get
    sharded work."""
    tb = min(tile_b, b_pad)
    if b_pad >= 4 * 2048:
        tb = min(tb, _round_up(pl.cdiv(b_pad, 4), LANES))
    elif b_pad >= 2 * 2048:
        tb = min(tb, _round_up(pl.cdiv(b_pad, 2), LANES))
    return tb


def _mlp_kernel(xt_ref, w1_ref, b1_ref, w2_ref, b2_ref, w3_ref, b3_ref, o_ref):
    """Fused 3-layer MLP on one batch tile, feature-major (batch on lanes).

    xt_ref : (D_PACK, tb) bf16      packed [numeric | one-hot | zero-pad] input
    w1_ref : (H_PAD, D_PACK) bf16   W1^T zero-padded
    w2_ref : (H_PAD, H_PAD) bf16    W2^T zero-padded
    w3_ref : (W3_ROWS, H_PAD) bf16  W3^T in row 0, rows 1.. zero
    b*_ref : f32 column biases (broadcast over lanes)
    o_ref  : (1, tb) f32            lane-dense logits
    """
    xt = xt_ref[...]                                               # bf16

    # Layer 1 (single merged dot, K=32): bf16 MXU, f32 accumulate.
    h = jnp.dot(w1_ref[...], xt, preferred_element_type=jnp.float32)
    h = h + b1_ref[...]                                            # (H_PAD,1) bcast
    h = jnp.maximum(h, LEAKY_SLOPE * h)                            # LeakyReLU (f32)
    h = h.astype(jnp.bfloat16)

    # Layer 2.
    h = jnp.dot(w2_ref[...], h, preferred_element_type=jnp.float32)
    h = h + b2_ref[...]
    h = jnp.maximum(h, LEAKY_SLOPE * h)
    h = h.astype(jnp.bfloat16)

    # Layer 3 on the MXU: (8, H_PAD) @ (H_PAD, tb); only row 0 is real.
    o = jnp.dot(w3_ref[...], h, preferred_element_type=jnp.float32)
    o_ref[...] = o[0:1, :] + b3_ref[...]                           # (1, tb)


def adults_classifier_forward(x, cat_x, params, *, tile_b=TILE_B):
    """x: (B, 14), cat_x: (B, 15) [bf16 or f32] -> (B, 1) float32 logits."""
    w1, b1, w2, b2, w3, b3 = params          # (in, out) layout, float32
    B = x.shape[0]
    B_pad = _round_up(max(B, 1), LANES)

    # --- layout plumbing (XLA side): pack, pad and transpose the input -----
    xp = jnp.concatenate(
        [x.astype(jnp.float32), cat_x.astype(jnp.float32)], axis=1)   # (B, 29)
    xp = jnp.pad(xp, ((0, B_pad - B), (0, D_PACK - D_IN)))            # (B_pad, 32)
    xt = xp.T.astype(jnp.bfloat16)                                     # (32, B_pad)

    # --- weights: transpose to (out, in), zero-pad, bf16 for the MXU -------
    w1t = _pad_to(w1.T, (H_PAD, D_PACK)).astype(jnp.bfloat16)   # (128, 32)
    w2t = _pad_to(w2.T, (H_PAD, H_PAD)).astype(jnp.bfloat16)    # (128, 128)
    w3t = _pad_to(w3.T, (W3_ROWS, H_PAD)).astype(jnp.bfloat16)  # (8, 128)
    b1c = _pad_to(b1.reshape(-1, 1), (H_PAD, 1))                # (128, 1) f32
    b2c = _pad_to(b2.reshape(-1, 1), (H_PAD, 1))                # (128, 1) f32
    b3c = b3.reshape(1, 1).astype(jnp.float32)                  # (1, 1)   f32

    tb = _choose_tile(B_pad, tile_b)
    grid = (pl.cdiv(B_pad, tb),)             # partial last block handled by Pallas

    const = lambda i: (0, 0)                 # weights stay VMEM-resident

    out = pl.pallas_call(
        _mlp_kernel,
        out_shape=jax.ShapeDtypeStruct((1, B_pad), jnp.float32),
        grid=grid,
        in_specs=[
            pl.BlockSpec((D_PACK, tb), lambda i: (0, i)),        # packed input^T
            pl.BlockSpec((H_PAD, D_PACK),  const),               # W1^T
            pl.BlockSpec((H_PAD, 1),       const),               # b1
            pl.BlockSpec((H_PAD, H_PAD),   const),               # W2^T
            pl.BlockSpec((H_PAD, 1),       const),               # b2
            pl.BlockSpec((W3_ROWS, H_PAD), const),               # W3^T (row 0)
            pl.BlockSpec((1, 1),           const),               # b3
        ],
        out_specs=pl.BlockSpec((1, tb), lambda i: (0, i)),       # lane-dense logits
        compiler_params=pltpu.CompilerParams(
            dimension_semantics=("parallel",)),
    )(xt, w1t, b1c, w2t, b2c, w3t, b3c)

    return out[0, :B].reshape(B, D_OUT)      # (B, 1) float32


def init_params(key):
    """Deterministic parameter init matching the nn.Linear shapes.

    Weights are generated in (in, out) layout (transpose of PyTorch's
    (out, in)); the wrapper re-transposes them for the feature-major kernel.
    """
    ks = jax.random.split(key, 6)
    w1 = jax.random.normal(ks[0], (D_IN, H1), jnp.float32) * 0.1
    b1 = jax.random.normal(ks[1], (H1,), jnp.float32) * 0.1
    w2 = jax.random.normal(ks[2], (H1, H2), jnp.float32) * 0.1
    b2 = jax.random.normal(ks[3], (H2,), jnp.float32) * 0.1
    w3 = jax.random.normal(ks[4], (H2, D_OUT), jnp.float32) * 0.1
    b3 = jax.random.normal(ks[5], (D_OUT,), jnp.float32) * 0.1
    return (w1, b1, w2, b2, w3, b3)


def _reference_forward(x, cat_x, params):
    """Pure-JAX f32 reference (same bf16 input quantization as the kernel)."""
    w1, b1, w2, b2, w3, b3 = params
    h = jnp.concatenate([x.astype(jnp.float32), cat_x.astype(jnp.float32)], axis=1)
    h = h @ w1 + b1
    h = jnp.maximum(h, LEAKY_SLOPE * h)
    h = h @ w2 + b2
    h = jnp.maximum(h, LEAKY_SLOPE * h)
    return h @ w3 + b3


if __name__ == "__main__":
    key = jax.random.PRNGKey(0)
    k_x, k_cat, k_p = jax.random.split(key, 3)

    B = 8
    # Inputs stored in bf16 (halves streamed HBM bytes); kernel also accepts f32.
    x = jax.random.normal(k_x, (B, NUM_NUMERIC), jnp.float32).astype(jnp.bfloat16)
    cat_idx = jax.random.randint(k_cat, (B,), 0, NUM_CAT)
    cat_x = jax.nn.one_hot(cat_idx, NUM_CAT, dtype=jnp.bfloat16)  # exact 0/1

    params = init_params(k_p)

    fwd = jax.jit(lambda a, c: adults_classifier_forward(a, c, params))
    out = jax.block_until_ready(fwd(x, cat_x))

    ref = _reference_forward(x, cat_x, params)
    assert out.shape == (B, D_OUT), out.shape
    # bf16 MXU operands -> looser agreement with the f32 reference.
    assert jnp.allclose(out, ref, atol=2e-2, rtol=2e-2), (out, ref)

    print("KERNEL_OK")
</pallas_src>

<mosaic_0001>
module attributes {stable_mosaic.version = 11 : i64} {
  func.func @_mlp_kernel(%arg0: i32, %arg1: memref<32x128xbf16, #tpu.memory_space<vmem>>, %arg2: memref<128x32xbf16, #tpu.memory_space<vmem>>, %arg3: memref<128x1xf32, #tpu.memory_space<vmem>>, %arg4: memref<128x128xbf16, #tpu.memory_space<vmem>>, %arg5: memref<128x1xf32, #tpu.memory_space<vmem>>, %arg6: memref<8x128xbf16, #tpu.memory_space<vmem>>, %arg7: memref<1x1xf32, #tpu.memory_space<vmem>>, %arg8: memref<1x128xf32, #tpu.memory_space<vmem>>) attributes {dimension_semantics = [#tpu.dimension_semantics<parallel>], iteration_bounds = array<i64: 1>, scalar_prefetch = 0 : i64, scratch_operands = 0 : i64, tpu.core_type = #tpu.core_type<tc>, window_params = [{transform_indices = @transform_0, window_bounds = array<i64: 32, 128>}, {pipeline_mode = #tpu.pipeline_mode<synchronous>, transform_indices = @transform_1, window_bounds = array<i64: 128, 32>}, {pipeline_mode = #tpu.pipeline_mode<synchronous>, transform_indices = @transform_2, window_bounds = array<i64: 128, 1>}, {pipeline_mode = #tpu.pipeline_mode<synchronous>, transform_indices = @transform_3, window_bounds = array<i64: 128, 128>}, {pipeline_mode = #tpu.pipeline_mode<synchronous>, transform_indices = @transform_4, window_bounds = array<i64: 128, 1>}, {pipeline_mode = #tpu.pipeline_mode<synchronous>, transform_indices = @transform_5, window_bounds = array<i64: 8, 128>}, {pipeline_mode = #tpu.pipeline_mode<synchronous>, transform_indices = @transform_6, window_bounds = array<i64: 1, 1>}, {transform_indices = @transform_7, window_bounds = array<i64: 1, 128>}]} {
    %c0 = arith.constant 0 : index
    %c0_0 = arith.constant 0 : index
    %0 = vector.load %arg1[%c0, %c0_0] : memref<32x128xbf16, #tpu.memory_space<vmem>>, vector<32x128xbf16>
    %c0_1 = arith.constant 0 : index
    %c0_2 = arith.constant 0 : index
    %1 = vector.load %arg2[%c0_1, %c0_2] : memref<128x32xbf16, #tpu.memory_space<vmem>>, vector<128x32xbf16>
    %cst = arith.constant dense<0.000000e+00> : vector<128x128xf32>
    %2 = tpu.matmul %1, %0, %cst {dimension_numbers = #tpu.dot_dimension_numbers<[1], [0], [0], [1], [0, 0, 1, 1], [], []>} : vector<128x32xbf16>, vector<32x128xbf16>, vector<128x128xf32> -> vector<128x128xf32>
    %c0_3 = arith.constant 0 : index
    %c0_4 = arith.constant 0 : index
    %3 = vector.load %arg3[%c0_3, %c0_4] : memref<128x1xf32, #tpu.memory_space<vmem>>, vector<128x1xf32>
    %4 = vector.broadcast %3 : vector<128x1xf32> to vector<128x128xf32>
    %5 = arith.addf %2, %4 : vector<128x128xf32>
    %cst_5 = arith.constant 0.00999999977 : f32
    %6 = vector.broadcast %cst_5 : f32 to vector<128x128xf32>
    %7 = arith.mulf %6, %5 : vector<128x128xf32>
    %8 = arith.maximumf %5, %7 : vector<128x128xf32>
    %9 = arith.truncf %8 : vector<128x128xf32> to vector<128x128xbf16>
    %c0_6 = arith.constant 0 : index
    %c0_7 = arith.constant 0 : index
    %10 = vector.load %arg4[%c0_6, %c0_7] : memref<128x128xbf16, #tpu.memory_space<vmem>>, vector<128x128xbf16>
    %cst_8 = arith.constant dense<0.000000e+00> : vector<128x128xf32>
    %11 = tpu.matmul %10, %9, %cst_8 {dimension_numbers = #tpu.dot_dimension_numbers<[1], [0], [0], [1], [0, 0, 1, 1], [], []>} : vector<128x128xbf16>, vector<128x128xbf16>, vector<128x128xf32> -> vector<128x128xf32>
    %c0_9 = arith.constant 0 : index
    %c0_10 = arith.constant 0 : index
    %12 = vector.load %arg5[%c0_9, %c0_10] : memref<128x1xf32, #tpu.memory_space<vmem>>, vector<128x1xf32>
    %13 = vector.broadcast %12 : vector<128x1xf32> to vector<128x128xf32>
    %14 = arith.addf %11, %13 : vector<128x128xf32>
    %cst_11 = arith.constant 0.00999999977 : f32
    %15 = vector.broadcast %cst_11 : f32 to vector<128x128xf32>
    %16 = arith.mulf %15, %14 : vector<128x128xf32>
    %17 = arith.maximumf %14, %16 : vector<128x128xf32>
    %18 = arith.truncf %17 : vector<128x128xf32> to vector<128x128xbf16>
    %c0_12 = arith.constant 0 : index
    %c0_13 = arith.constant 0 : index
    %19 = vector.load %arg6[%c0_12, %c0_13] : memref<8x128xbf16, #tpu.memory_space<vmem>>, vector<8x128xbf16>
    %cst_14 = arith.constant dense<0.000000e+00> : vector<8x128xf32>
    %20 = tpu.matmul %19, %18, %cst_14 {dimension_numbers = #tpu.dot_dimension_numbers<[1], [0], [0], [1], [0, 0, 1, 1], [], []>} : vector<8x128xbf16>, vector<128x128xbf16>, vector<8x128xf32> -> vector<8x128xf32>
    %21 = vector.extract_strided_slice %20 {offsets = [0, 0], sizes = [1, 128], strides = [1, 1]} : vector<8x128xf32> to vector<1x128xf32>
    %c0_15 = arith.constant 0 : index
    %c0_16 = arith.constant 0 : index
    %22 = vector.load %arg7[%c0_15, %c0_16] : memref<1x1xf32, #tpu.memory_space<vmem>>, vector<1x1xf32>
    %23 = vector.broadcast %22 : vector<1x1xf32> to vector<1x128xf32>
    %24 = arith.addf %21, %23 : vector<1x128xf32>
    %c0_17 = arith.constant 0 : index
    %c0_18 = arith.constant 0 : index
    %25 = vector.load %arg8[%c0_17, %c0_18] : memref<1x128xf32, #tpu.memory_space<vmem>>, vector<1x128xf32>
    tpu.vector_store %arg8[%c0_17, %c0_18], %24 {strides = array<i32>} : memref<1x128xf32, #tpu.memory_space<vmem>>, vector<1x128xf32>,
    return
  }
  func.func @transform_0(%arg0: i32) -> (i32, i32) {
    %c0_i32 = arith.constant 0 : i32
    %c0_i32_0 = arith.constant 0 : i32
    return %c0_i32, %arg0 : i32, i32
  }
  func.func @transform_1(%arg0: i32) -> (i32, i32) {
    %c0_i32 = arith.constant 0 : i32
    %c0_i32_0 = arith.constant 0 : i32
    %c0_i32_1 = arith.constant 0 : i32
    return %c0_i32, %c0_i32_0 : i32, i32
  }
  func.func @transform_2(%arg0: i32) -> (i32, i32) {
    %c0_i32 = arith.constant 0 : i32
    %c0_i32_0 = arith.constant 0 : i32
    %c0_i32_1 = arith.constant 0 : i32
    return %c0_i32, %c0_i32_0 : i32, i32
  }
  func.func @transform_3(%arg0: i32) -> (i32, i32) {
    %c0_i32 = arith.constant 0 : i32
    %c0_i32_0 = arith.constant 0 : i32
    %c0_i32_1 = arith.constant 0 : i32
    return %c0_i32, %c0_i32_0 : i32, i32
  }
  func.func @transform_4(%arg0: i32) -> (i32, i32) {
    %c0_i32 = arith.constant 0 : i32
    %c0_i32_0 = arith.constant 0 : i32
    %c0_i32_1 = arith.constant 0 : i32
    return %c0_i32, %c0_i32_0 : i32, i32
  }
  func.func @transform_5(%arg0: i32) -> (i32, i32) {
    %c0_i32 = arith.constant 0 : i32
    %c0_i32_0 = arith.constant 0 : i32
    %c0_i32_1 = arith.constant 0 : i32
    return %c0_i32, %c0_i32_0 : i32, i32
  }
  func.func @transform_6(%arg0: i32) -> (i32, i32) {
    %c0_i32 = arith.constant 0 : i32
    %c0_i32_0 = arith.constant 0 : i32
    %c0_i32_1 = arith.constant 0 : i32
    return %c0_i32, %c0_i32_0 : i32, i32
  }
  func.func @transform_7(%arg0: i32) -> (i32, i32) {
    %c0_i32 = arith.constant 0 : i32
    %c0_i32_0 = arith.constant 0 : i32
    return %c0_i32, %arg0 : i32, i32
  }
}

</mosaic_0001>

<bundles_post_ra>
// kernel: _lambda_.1
= control target key start
LH: loop header
LB: loop body
LE: loop exit
PB: predicated region body
PF: predicated region fallthrough
CT: control target
= control target key end

     0   :  { %s960_s0 = inlined_call_operand.vmem [shape: bf16[32,128], index: 0, kind: input, shape index: {}]   ;;  %s961_s1 = inlined_call_operand.hbm [shape: bf16[128,32], index: 1, kind: input, shape index: {}]   ;;  %s962_s2 = inlined_call_operand.hbm [shape: f32[128,1], index: 2, kind: input, shape index: {}]   ;;  %s963_s3 = inlined_call_operand.vmem [shape: bf16[128,128], index: 3, kind: input, shape index: {}]   ;;  %s964_s4 = inlined_call_operand.hbm [shape: f32[128,1], index: 4, kind: input, shape index: {}]   ;;  %s965_s5 = inlined_call_operand.vmem [shape: bf16[8,128], index: 5, kind: input, shape index: {}]   ;;  %s966_s6 = inlined_call_operand.<no memory space> [shape: f32[1,1], index: 6, kind: input, shape index: {}]   ;;  %s967_s7 = inlined_call_operand.vmem [shape: f32[1,128], index: 7, kind: output, shape index: {}]  }
   0x1   :  { %v12_v0 = vstv %s966_s6 }
   0x2   :  { %13 = vst [vmem:[#allocation2] sm:$0x1] %v12_v0 }
   0x3   :  { %14 = vsyncpa [#allocation4], 0 }
   0x4   :  { %15 = vsyncpa [#allocation6], 0  ;;  %s35_s28 = sshll.u32 %s962_s2, 4  ;;  %s831_s29 = smov [#allocation5]   ;;  %s36_s28 = int_to_ptr.hbm [resolvable:$true] %s35_s28 }
   0x5   :  { %s37_s30 = sshll.u32 %s831_s29, 4  ;;  %s22_s10 = sshll.u32 %s961_s1, 4  ;;  %s38_s30 = int_to_ptr.vmem [resolvable:$true] %s37_s30  ;;  %s23_s10 = int_to_ptr.hbm [resolvable:$true] %s22_s10 }
   0x6   :  { %s832_s11 = smov 128   ;;  %s833_s12 = smov 8  }
   0x7   :  { %43 = dma.hbm_to_vmem [thread:$0]  %s36_s28, 2048, %s38_s30, [#allocation6], %s832_s11, %s832_s11, %s833_s12  }
   0x8   :  { %s834_s6 = smov [#allocation3]   ;;  %s835_s14 = smov 64  }
   0x9   :  { %s24_s13 = sshll.u32 %s834_s6, 4  ;;  %s836_s15 = smov 4   ;;  %s25_s13 = int_to_ptr.vmem [resolvable:$true] %s24_s13 }
   0xa   :  { %30 = dma.hbm_to_vmem [thread:$0]  %s23_s10, 1024, %s25_s13, [#allocation4], %s835_s14, %s835_s14, %s836_s15  }
   0xb   :  { %s50_s17 = sshll.u32 %s964_s4, 4  ;;  %s837_s18 = smov [#allocation7]   ;;  %s51_s17 = int_to_ptr.hbm [resolvable:$true] %s50_s17 }
   0xc   :  { %s52_s19 = sshll.u32 %s837_s18, 4  ;;  %s53_s19 = int_to_ptr.vmem [resolvable:$true] %s52_s19 }
   0xd   :  { %58 = dma.hbm_to_vmem [thread:$0]  %s51_s17, 2048, %s53_s19, [#allocation6], %s832_s11, %s832_s11, %s833_s12  }
   0xe   :  { %827 = dma.done.wait [#allocation4], 1024  }
   0xf   :  { %828 = vsyncadd [#allocation4], 4294966272 }
  0x10   :  { %829 = dma.done.wait [#allocation6], 4096  }
  0x11   :  { %830 = vsyncadd [#allocation6], 4294963200  ;;  %v838_v1 = vmov 0   ;;  %v110_v2 = vld [vmem:[#allocation5 + $0x70] sm:$0xff]  ;;  %v108_v3 = vld [vmem:[#allocation5 + $0x60] sm:$0xff]  ;;  %vm244_vm0 = vcmask 261120  }
  0x12   :  { %753 = vset.pattern.permute.xlu1 %v838_v1  ;;  %752 = vset.pattern.permute.xlu0 %v838_v1  ;;  %v717_v4 = vld [vmem:[%s960_s0 + $0x8] sm:$0xff]  ;;  %v716_v5 = vld [vmem:[%s960_s0] sm:$0xff]  ;;  %v106_v6 = vld [vmem:[#allocation5 + $0x50] sm:$0xff] }
  0x13   :  { %754 = vset.pattern.permute.xlu2 %v838_v1  ;;  %184 = vperm.xlu0 %752, %v110_v2   ;;  %v111_v7 = vld [vmem:[#allocation5 + $0x78] sm:$0xff]  ;;  %v109_v8 = vld [vmem:[#allocation5 + $0x68] sm:$0xff]  ;;  %v718_v9 = vld [vmem:[#allocation3] sm:$0xff] }
  0x14   :  { %174 = vperm.xlu1 %753, %v108_v3   ;;  %275 = vmatpush.bf16.msra.mxu0 %v717_v4  ;;  %v723_v10 = vld [vmem:[#allocation3 + $0x28] sm:$0xff]  ;;  %v107_v11 = vld [vmem:[#allocation5 + $0x58] sm:$0xff]  ;;  %v104_v13 = vld [vmem:[#allocation5 + $0x40] sm:$0xff] }
  0x15   :  { %734 = vmatpush.bf16.msra.mxu2 %v717_v4  ;;  %164 = vperm.xlu2 %754, %v106_v6   ;;  %v105_v12 = vld [vmem:[#allocation5 + $0x48] sm:$0xff]  ;;  %v102_v14 = vld [vmem:[#allocation5 + $0x30] sm:$0xff]  ;;  %v103_v15 = vld [vmem:[#allocation5 + $0x38] sm:$0xff] }
  0x16   :  { %v100_v16 = vld [vmem:[#allocation5 + $0x20] sm:$0xff]  ;;  %v719_v17 = vld [vmem:[#allocation3 + $0x8] sm:$0xff]  ;;  %v724_v18 = vld [vmem:[#allocation3 + $0x30] sm:$0xff] }
  0x17   :  { %v101_v19 = vld [vmem:[#allocation5 + $0x28] sm:$0xff]  ;;  %v99_v20 = vld [vmem:[#allocation5 + $0x18] sm:$0xff]  ;;  %v98_v21 = vld [vmem:[#allocation5 + $0x10] sm:$0xff] }
  0x18   :  { %276 = vmatpush.bf16.msra.mxu0 %v716_v5  ;;  %v96_v22 = vld [vmem:[#allocation5] sm:$0xff]  ;;  %v388_v23 = vld [vmem:[#allocation7 + $0x70] sm:$0xff]  ;;  %v97_v24 = vld [vmem:[#allocation5 + $0x8] sm:$0xff] }
  0x19   :  { %735 = vmatpush.bf16.msra.mxu2 %v716_v5  ;;  %v720_v25 = vld [vmem:[#allocation3 + $0x10] sm:$0xff]  ;;  %v725_v26 = vld [vmem:[#allocation3 + $0x38] sm:$0xff]  ;;  %v387_v28 = vld [vmem:[#allocation7 + $0x68] sm:$0xff] }
  0x1a   :  { %v389_v27 = vld [vmem:[#allocation7 + $0x78] sm:$0xff]  ;;  %v386_v29 = vld [vmem:[#allocation7 + $0x60] sm:$0xff]  ;;  %v384_v30 = vld [vmem:[#allocation7 + $0x50] sm:$0xff] }
  0x1b   :  { %189 = vperm.xlu0 %752, %v111_v7   ;;  %676 = vmatmul.msk.bf16.vlgmr.msra.gmra.mxu0 %vm244_vm0, %v718_v9  ;;  %v382_v31 = vld [vmem:[#allocation7 + $0x40] sm:$0xff]  ;;  %v385_v32 = vld [vmem:[#allocation7 + $0x58] sm:$0xff]  ;;  %v383_v34 = vld [vmem:[#allocation7 + $0x48] sm:$0xff] }
  0x1c   :  { %179 = vperm.xlu1 %753, %v109_v8   ;;  %681 = vmatmul.msk.bf16.vlgmr.msra.gmra.mxu2 %vm244_vm0, %v723_v10  ;;  %v721_v33 = vld [vmem:[#allocation3 + $0x18] sm:$0xff]  ;;  %v380_v36 = vld [vmem:[#allocation7 + $0x30] sm:$0xff]  ;;  %v378_v37 = vld [vmem:[#allocation7 + $0x20] sm:$0xff] }
  0x1d   :  { %169 = vperm.xlu2 %754, %v107_v11   ;;  %v381_v35 = vld [vmem:[#allocation7 + $0x38] sm:$0xff]  ;;  %v376_v38 = vld [vmem:[#allocation7 + $0x10] sm:$0xff]  ;;  %v379_v39 = vld [vmem:[#allocation7 + $0x28] sm:$0xff] }
  0x1e   :  { %v722_v40 = vld [vmem:[#allocation3 + $0x20] sm:$0xff]  ;;  %v377_v41 = vld [vmem:[#allocation7 + $0x18] sm:$0xff]  ;;  %v375_v42 = vld [vmem:[#allocation7 + $0x8] sm:$0xff] }
  0x1f   :  { %v374_v43 = vld [vmem:[#allocation7] sm:$0xff]  ;;  %v621_v44 = vld [vmem:[#allocation2] sm:$0x1] }
  0x23   :  { %154 = vperm.xlu0 %752, %v104_v13  }
  0x24   :  { %159 = vperm.xlu1 %753, %v105_v12  }
  0x25   :  { %144 = vperm.xlu2 %754, %v102_v14  }
  0x2b   :  { %149 = vperm.xlu0 %752, %v103_v15   ;;  %677 = vmatmul.msk.bf16.gmra.mxu0 %vm244_vm0, %v719_v17 }
  0x2c   :  { %134 = vperm.xlu1 %753, %v100_v16   ;;  %682 = vmatmul.msk.bf16.gmra.mxu2 %vm244_vm0, %v724_v18 }
  0x2d   :  { %139 = vperm.xlu2 %754, %v101_v19  }
  0x33   :  { %124 = vperm.xlu0 %752, %v98_v21  }
  0x34   :  { %129 = vperm.xlu1 %753, %v99_v20  }
  0x35   :  { %114 = vperm.xlu2 %754, %v96_v22  }
  0x3b   :  { %119 = vperm.xlu0 %752, %v97_v24   ;;  %678 = vmatmul.msk.bf16.gmra.mxu0 %vm244_vm0, %v720_v25 }
  0x3c   :  { %462 = vperm.xlu1 %753, %v388_v23   ;;  %683 = vmatmul.msk.bf16.gmra.mxu2 %vm244_vm0, %v725_v26 }
  0x3d   :  { %467 = vperm.xlu2 %754, %v389_v27  }
  0x43   :  { %452 = vperm.xlu0 %752, %v386_v29  }
  0x44   :  { %457 = vperm.xlu1 %753, %v387_v28  }
  0x45   :  { %442 = vperm.xlu2 %754, %v384_v30  }
  0x4b   :  { %447 = vperm.xlu0 %752, %v385_v32   ;;  %679 = vmatmul.msk.bf16.gmra.mxu0 %vm244_vm0, %v721_v33 }
  0x4c   :  { %432 = vperm.xlu1 %753, %v382_v31  }
  0x4d   :  { %437 = vperm.xlu2 %754, %v383_v34  }
  0x53   :  { %422 = vperm.xlu0 %752, %v380_v36  }
  0x54   :  { %427 = vperm.xlu1 %753, %v381_v35  }
  0x55   :  { %412 = vperm.xlu2 %754, %v378_v37  }
  0x5b   :  { %417 = vperm.xlu0 %752, %v379_v39   ;;  %680 = vmatmul.msk.bf16.gmra.mxu0 %vm244_vm0, %v722_v40 }
  0x5c   :  { %402 = vperm.xlu1 %753, %v376_v38  }
  0x5d   :  { %407 = vperm.xlu2 %754, %v377_v41  }
  0x63   :  { %392 = vperm.xlu0 %752, %v374_v43  }
  0x64   :  { %397 = vperm.xlu1 %753, %v375_v42  }
  0x65   :  { %624 = vperm.xlu2 %754, %v621_v44  }
  0x6f   :  { %v165_v45 = vpop.permute.xlu2 %164 }
  0x77   :  { %v170_v47 = vpop.permute.xlu2 %169 }
  0x7f   :  { %v905_v49 = vpop.permute.xlu2 %144 }
  0x85   :  { %v185_v46 = vpop.permute.xlu0 %184 }
  0x86   :  { %v175_v8 = vpop.permute.xlu1 %174 }
  0x87   :  { %v907_v52 = vpop.permute.xlu2 %139 }
  0x8d   :  { %v190_v48 = vpop.permute.xlu0 %189 }
  0x8e   :  { %v180_v12 = vpop.permute.xlu1 %179 }
  0x8f   :  { %v115_v57 = vpop.permute.xlu2 %114 }
  0x95   :  { %v155_v50 = vpop.permute.xlu0 %154 }
  0x96   :  { %v160_v35 = vpop.permute.xlu1 %159 }
  0x98   :  { %v278_v51 = vpop.f32.mrf.mxu0 }
  0x99   :  { %v279_v60 = vadd.f32 %v278_v51, %v115_v57 }
  0x9b   :  { %v318_v62 = vmul.f32 0.01, %v279_v60 }
  0x9d   :  { %v150_v53 = vpop.permute.xlu0 %149  ;;  %v334_v3 = vmax.f32 %v279_v60, %v318_v62 }
  0x9e   :  { %v135_v38 = vpop.permute.xlu1 %134 }
  0x9f   :  { %v303_v54 = vpop.f32.mrf.mxu2 }
  0xa0   :  { %v280_v55 = vpop.f32.mrf.mxu0  ;;  %v304_v18 = vadd.f32 %v303_v54, %v165_v45 }
  0xa2   :  { %v328_v26 = vmul.f32 0.01, %v304_v18 }
  0xa4   :  { %v344_v32 = vmax.f32 %v304_v18, %v328_v26 }
  0xa5   :  { %v909_v56 = vpop.permute.xlu0 %124 }
  0xa6   :  { %v130_v57 = vpop.permute.xlu1 %129 }
  0xa7   :  { %v305_v58 = vpop.f32.mrf.mxu2 }
  0xa8   :  { %v911_v59 = vpop.f32.mrf.mxu0  ;;  %v306_v19 = vadd.f32 %v305_v58, %v170_v47 }
  0xaa   :  { %v329_v27 = vmul.f32 0.01, %v306_v19 }
  0xac   :  { %v345_v33 = vmax.f32 %v306_v19, %v329_v27 }
  0xad   :  { %v120_v61 = vpop.permute.xlu0 %119 }
  0xae   :  { %v281_v63 = vadd.f32 %v280_v55, %v120_v61  ;;  %v355_v36 = vpack.c.bf16 %v345_v33, %v344_v32 }
  0xaf   :  { %v308_v0 = vpop.f32.mrf.mxu2 }
  0xb0   :  { %v319_v1 = vmul.f32 0.01, %v281_v63  ;;  %v285_v2 = vpop.f32.mrf.mxu0  ;;  %v309_v13 = vadd.f32 %v308_v0, %v175_v8  ;;  %v727_v8 = vld [vmem:[%s963_s3 + $0x8] sm:$0xff] }
  0xb1   :  { %v286_v58 = vadd.f32 %v285_v2, %v130_v57 }
  0xb2   :  { %v335_v4 = vmax.f32 %v281_v63, %v319_v1  ;;  %v330_v21 = vmul.f32 0.01, %v309_v13 }
  0xb3   :  { %v321_v63 = vmul.f32 0.01, %v286_v58 }
  0xb4   :  { %v913_v5 = vpack.c.bf16 %v335_v4, %v334_v3  ;;  %v346_v28 = vmax.f32 %v309_v13, %v330_v21  ;;  %v463_v21 = vpop.permute.xlu1 %462 }
  0xb5   :  { %v337_v4 = vmax.f32 %v286_v58, %v321_v63  ;;  %v453_v26 = vpop.permute.xlu0 %452 }
  0xb7   :  { %v310_v6 = vpop.f32.mrf.mxu2 }
  0xb8   :  { %v288_v7 = vpop.f32.mrf.mxu0  ;;  %v311_v14 = vadd.f32 %v310_v6, %v180_v12  ;;  %v733_v12 = vld [vmem:[%s963_s3 + $0x38] sm:$0xff] }
  0xba   :  { %v331_v22 = vmul.f32 0.01, %v311_v14 }
  0xbc   :  { %v347_v29 = vmax.f32 %v311_v14, %v331_v22 }
  0xbd   :  { %v448_v32 = vpop.permute.xlu0 %447 }
  0xbe   :  { %v356_v34 = vpack.c.bf16 %v347_v29, %v346_v28 }
  0xbf   :  { %v313_v9 = vpop.f32.mrf.mxu2 }
  0xc0   :  { %v290_v10 = vpop.f32.mrf.mxu0  ;;  %v314_v11 = vadd.f32 %v313_v9, %v185_v46  ;;  %v731_v9 = vld [vmem:[%s963_s3 + $0x28] sm:$0xff] }
  0xc1   :  { %v291_v45 = vadd.f32 %v290_v10, %v907_v52  ;;  %v728_v10 = vld [vmem:[%s963_s3 + $0x10] sm:$0xff] }
  0xc2   :  { %v332_v15 = vmul.f32 0.01, %v314_v11 }
  0xc3   :  { %v323_v60 = vmul.f32 0.01, %v291_v45 }
  0xc4   :  { %v348_v23 = vmax.f32 %v314_v11, %v332_v15  ;;  %v729_v11 = vld [vmem:[%s963_s3 + $0x18] sm:$0xff] }
  0xc5   :  { %v339_v52 = vmax.f32 %v291_v45, %v323_v60  ;;  %v423_v45 = vpop.permute.xlu0 %422 }
  0xc7   :  { %v315_v16 = vpop.f32.mrf.mxu2 }
  0xc8   :  { %v316_v17 = vadd.f32 %v315_v16, %v190_v48  ;;  %v293_v20 = vpop.f32.mrf.mxu0  ;;  %v289_v48 = vadd.f32 %v288_v7, %v135_v38 }
  0xc9   :  { %v294_v42 = vadd.f32 %v293_v20, %v905_v49 }
  0xca   :  { %v333_v24 = vmul.f32 0.01, %v316_v17 }
  0xcb   :  { %v324_v51 = vmul.f32 0.01, %v294_v42 }
  0xcc   :  { %v349_v25 = vmax.f32 %v316_v17, %v333_v24 }
  0xcd   :  { %v340_v49 = vmax.f32 %v294_v42, %v324_v51 }
  0xce   :  { %v357_v30 = vpack.c.bf16 %v349_v25, %v348_v23  ;;  %v468_v23 = vpop.permute.xlu2 %467  ;;  %v458_v25 = vpop.permute.xlu1 %457 }
  0xd0   :  { %518 = vmatpush.bf16.msra.mxu1 %v357_v30  ;;  %736 = vmatpush.bf16.msra.mxu3 %v357_v30  ;;  %v295_v31 = vpop.f32.mrf.mxu0 }
  0xd1   :  { %v296_v40 = vadd.f32 %v295_v31, %v150_v53  ;;  %v322_v53 = vmul.f32 0.01, %v289_v48 }
  0xd3   :  { %v325_v46 = vmul.f32 0.01, %v296_v40  ;;  %v338_v3 = vmax.f32 %v289_v48, %v322_v53 }
  0xd4   :  { %519 = vmatpush.bf16.msra.mxu1 %v356_v34  ;;  %737 = vmatpush.bf16.msra.mxu3 %v356_v34 }
  0xd5   :  { %v341_v61 = vmax.f32 %v296_v40, %v325_v46  ;;  %v352_v6 = vpack.c.bf16 %v339_v52, %v338_v3 }
  0xd6   :  { %v443_v28 = vpop.permute.xlu2 %442  ;;  %v433_v30 = vpop.permute.xlu1 %432 }
  0xd7   :  { %v353_v0 = vpack.c.bf16 %v341_v61, %v340_v49 }
  0xd8   :  { %520 = vmatpush.bf16.msra.mxu1 %v355_v36  ;;  %738 = vmatpush.bf16.msra.mxu3 %v355_v36  ;;  %v298_v37 = vpop.f32.mrf.mxu0 }
  0xd9   :  { %v299_v39 = vadd.f32 %v298_v37, %v155_v50  ;;  %v284_v50 = vadd.f32 %v911_v59, %v909_v56  ;;  %v726_v56 = vld [vmem:[%s963_s3] sm:$0xff] }
  0xda   :  { %v730_v59 = vld [vmem:[%s963_s3 + $0x20] sm:$0xff] }
  0xdb   :  { %v326_v43 = vmul.f32 0.01, %v299_v39  ;;  %v320_v1 = vmul.f32 0.01, %v284_v50 }
  0xdd   :  { %v342_v54 = vmax.f32 %v299_v39, %v326_v43  ;;  %v336_v2 = vmax.f32 %v284_v50, %v320_v1 }
  0xde   :  { %v438_v34 = vpop.permute.xlu2 %437 }
  0xdf   :  { %v351_v7 = vpack.c.bf16 %v337_v4, %v336_v2  ;;  %v418_v2 = vpop.permute.xlu0 %417 }
  0xe0   :  { %v300_v41 = vpop.f32.mrf.mxu0 }
  0xe1   :  { %v301_v44 = vadd.f32 %v300_v41, %v160_v35  ;;  %v428_v41 = vpop.permute.xlu1 %427 }
  0xe3   :  { %v327_v47 = vmul.f32 0.01, %v301_v44 }
  0xe5   :  { %v343_v55 = vmax.f32 %v301_v44, %v327_v47 }
  0xe6   :  { %v413_v60 = vpop.permute.xlu2 %412 }
  0xe7   :  { %v354_v62 = vpack.c.bf16 %v343_v55, %v342_v54 }
  0xe9   :  { %521 = vmatpush.bf16.msra.mxu1 %v354_v62  ;;  %739 = vmatpush.bf16.msra.mxu3 %v354_v62  ;;  %v403_v1 = vpop.permute.xlu1 %402 }
  0xed   :  { %522 = vmatpush.bf16.msra.mxu1 %v353_v0  ;;  %740 = vmatpush.bf16.msra.mxu3 %v353_v0 }
  0xf1   :  { %523 = vmatpush.bf16.msra.mxu1 %v352_v6  ;;  %741 = vmatpush.bf16.msra.mxu3 %v352_v6 }
  0xf5   :  { %524 = vmatpush.bf16.msra.mxu1 %v351_v7  ;;  %742 = vmatpush.bf16.msra.mxu3 %v351_v7 }
  0xf9   :  { %525 = vmatpush.bf16.msra.mxu1 %v913_v5  ;;  %743 = vmatpush.bf16.msra.mxu3 %v913_v5  ;;  %v732_v5 = vld [vmem:[%s963_s3 + $0x30] sm:$0xff] }
  0xfc   :  { %526 = vmatmul.bf16.vlgmr.msra.gmra.mxu1 %v726_v56  ;;  %546 = vmatmul.bf16.vlgmr.msra.gmra.mxu3 %v730_v59 }
 0x10c   :  { %531 = vmatmul.bf16.gmra.mxu1 %v727_v8  ;;  %551 = vmatmul.bf16.gmra.mxu3 %v731_v9 }
 0x11c   :  { %536 = vmatmul.bf16.gmra.mxu1 %v728_v10  ;;  %556 = vmatmul.bf16.gmra.mxu3 %v732_v5 }
 0x12c   :  { %541 = vmatmul.bf16.gmra.mxu1 %v729_v11  ;;  %561 = vmatmul.bf16.gmra.mxu3 %v733_v12  ;;  %v408_v11 = vpop.permute.xlu2 %407 }
 0x179   :  { %v945_v13 = vpop.f32.mrf.mxu1 }
 0x17f   :  { %v547_v14 = vpop.f32.mrf.mxu3 }
 0x180   :  { %v548_v62 = vadd.f32 %v547_v14, %v433_v30 }
 0x181   :  { %v947_v15 = vpop.f32.mrf.mxu1 }
 0x182   :  { %v575_v3 = vmul.f32 0.01, %v548_v62 }
 0x184   :  { %v591_v9 = vmax.f32 %v548_v62, %v575_v3 }
 0x187   :  { %v549_v16 = vpop.f32.mrf.mxu3 }
 0x188   :  { %v550_v54 = vadd.f32 %v549_v16, %v438_v34 }
 0x189   :  { %v949_v17 = vpop.f32.mrf.mxu1 }
 0x18a   :  { %v576_v49 = vmul.f32 0.01, %v550_v54 }
 0x18c   :  { %v592_v7 = vmax.f32 %v550_v54, %v576_v49 }
 0x18f   :  { %v552_v18 = vpop.f32.mrf.mxu3 }
 0x190   :  { %v553_v46 = vadd.f32 %v552_v18, %v443_v28  ;;  %v603_v18 = vpack.c.bf16 %v592_v7, %v591_v9 }
 0x191   :  { %v534_v19 = vpop.f32.mrf.mxu1 }
 0x192   :  { %v577_v50 = vmul.f32 0.01, %v553_v46  ;;  %v535_v12 = vadd.f32 %v534_v19, %v408_v11 }
 0x194   :  { %v593_v4 = vmax.f32 %v553_v46, %v577_v50 }
 0x197   :  { %v554_v20 = vpop.f32.mrf.mxu3 }
 0x198   :  { %v555_v42 = vadd.f32 %v554_v20, %v448_v32  ;;  %v533_v20 = vadd.f32 %v949_v17, %v403_v1 }
 0x199   :  { %v537_v24 = vpop.f32.mrf.mxu1 }
 0x19a   :  { %v578_v55 = vmul.f32 0.01, %v555_v42  ;;  %v538_v10 = vadd.f32 %v537_v24, %v413_v60  ;;  %v569_v30 = vmul.f32 0.01, %v533_v20 }
 0x19c   :  { %v594_v63 = vmax.f32 %v555_v42, %v578_v55  ;;  %v585_v17 = vmax.f32 %v533_v20, %v569_v30 }
 0x19e   :  { %v604_v8 = vpack.c.bf16 %v594_v63, %v593_v4 }
 0x19f   :  { %v557_v22 = vpop.f32.mrf.mxu3 }
 0x1a0   :  { %v558_v38 = vadd.f32 %v557_v22, %v453_v26  ;;  %v570_v26 = vmul.f32 0.01, %v535_v12 }
 0x1a1   :  { %v539_v29 = vpop.f32.mrf.mxu1 }
 0x1a2   :  { %v579_v47 = vmul.f32 0.01, %v558_v38  ;;  %v540_v56 = vadd.f32 %v539_v29, %v418_v2  ;;  %v393_v29 = vpop.permute.xlu0 %392  ;;  %v586_v32 = vmax.f32 %v535_v12, %v570_v26 }
 0x1a3   :  { %v528_v24 = vadd.f32 %v945_v13, %v393_v29  ;;  %v625_v13 = vpop.permute.xlu2 %624 }
 0x1a4   :  { %v595_v53 = vmax.f32 %v558_v38, %v579_v47  ;;  %v572_v14 = vmul.f32 0.01, %v540_v56  ;;  %v607_v38 = vld [vmem:[%s965_s5] sm:$0xf] }
 0x1a5   :  { %v567_v34 = vmul.f32 0.01, %v528_v24 }
 0x1a7   :  { %v559_v27 = vpop.f32.mrf.mxu3 }
 0x1a8   :  { %v560_v36 = vadd.f32 %v559_v27, %v458_v25  ;;  %v588_v27 = vmax.f32 %v540_v56, %v572_v14 }
 0x1a9   :  { %v542_v35 = vpop.f32.mrf.mxu1 }
 0x1aa   :  { %v580_v43 = vmul.f32 0.01, %v560_v36  ;;  %v543_v6 = vadd.f32 %v542_v35, %v423_v45 }
 0x1ac   :  { %v596_v57 = vmax.f32 %v560_v36, %v580_v43  ;;  %v573_v5 = vmul.f32 0.01, %v543_v6  ;;  %v600_v36 = vpack.c.bf16 %v586_v32, %v585_v17 }
 0x1ae   :  { %v605_v0 = vpack.c.bf16 %v596_v57, %v595_v53  ;;  %v589_v22 = vmax.f32 %v543_v6, %v573_v5 }
 0x1af   :  { %v562_v31 = vpop.f32.mrf.mxu3 }
 0x1b0   :  { %v563_v33 = vadd.f32 %v562_v31, %v463_v21  ;;  %v571_v21 = vmul.f32 0.01, %v538_v10 }
 0x1b1   :  { %v544_v61 = vpop.f32.mrf.mxu1 }
 0x1b2   :  { %v581_v39 = vmul.f32 0.01, %v563_v33  ;;  %v545_v52 = vadd.f32 %v544_v61, %v428_v41  ;;  %v587_v31 = vmax.f32 %v538_v10, %v571_v21 }
 0x1b4   :  { %v597_v48 = vmax.f32 %v563_v33, %v581_v39  ;;  %v574_v59 = vmul.f32 0.01, %v545_v52  ;;  %v601_v33 = vpack.c.bf16 %v588_v27, %v587_v31  ;;  %v627_v39 = vperm.slane %v625_v13, 0 }
 0x1b6   :  { %v590_v16 = vmax.f32 %v545_v52, %v574_v59 }
 0x1b7   :  { %v564_v37 = vpop.f32.mrf.mxu3 }
 0x1b8   :  { %v565_v40 = vadd.f32 %v564_v37, %v468_v23  ;;  %v398_v23 = vpop.permute.xlu1 %397  ;;  %v602_v28 = vpack.c.bf16 %v590_v16, %v589_v22  ;;  %v583_v37 = vmax.f32 %v528_v24, %v567_v34 }
 0x1b9   :  { %v530_v25 = vadd.f32 %v947_v15, %v398_v23 }
 0x1ba   :  { %v582_v44 = vmul.f32 0.01, %v565_v40 }
 0x1bb   :  { %v568_v19 = vmul.f32 0.01, %v530_v25 }
 0x1bc   :  { %v598_v51 = vmax.f32 %v565_v40, %v582_v44 }
 0x1bd   :  { %v584_v35 = vmax.f32 %v530_v25, %v568_v19 }
 0x1be   :  { %v606_v58 = vpack.c.bf16 %v598_v51, %v597_v48 }
 0x1bf   :  { %v599_v15 = vpack.c.bf16 %v584_v35, %v583_v37 }
 0x1c0   :  { %608 = vmatpush.bf16.msrb.mxu2 %v606_v58 }
 0x1c4   :  { %609 = vmatpush.bf16.msrb.mxu2 %v605_v0 }
 0x1c8   :  { %610 = vmatpush.bf16.msrb.mxu2 %v604_v8 }
 0x1cc   :  { %611 = vmatpush.bf16.msrb.mxu2 %v603_v18 }
 0x1d0   :  { %612 = vmatpush.bf16.msrb.mxu2 %v602_v28 }
 0x1d4   :  { %613 = vmatpush.bf16.msrb.mxu2 %v601_v33 }
 0x1d8   :  { %614 = vmatpush.bf16.msrb.mxu2 %v600_v36 }
 0x1dc   :  { %615 = vmatpush.bf16.msrb.mxu2 %v599_v15 }
 0x1df   :  { %616 = vmatmul.bf16.vlgmr.msrb.gmra.mxu2 %v607_v38 }
 0x262   :  { %v617_v40 = vpop.f32.mrf.mxu2 }
 0x263   :  { %v628_v41 = vadd.f32 %v627_v39, %v617_v40 }
 0x265   :  { %629 = vst [vmem:[%s967_s7] sm:$0x1] %v628_v41 }
 0x26a   :  { %v619_v42 = vpop.f32.mrf.mxu2 }
 0x26b   :  { %634 = vsyncpa [#allocation4], 1 }
 0x26c   :  { %635 = vsyncpa [#allocation6], 1 }

</bundles_post_ra>
